<compile_context>
chip_gen: v7x
topology: tpu7x:2x2x1
jax: 0.10.0
libtpu: 0.0.40
codegen_flags: <defaults>
</compile_context>

<pallas_src>
import jax
import jax.numpy as jnp
from jax.experimental import pallas as pl
from jax.experimental.pallas import tpu as pltpu

_LANE = 128
_SUBLANE = 8
_TILE_B = 256  # batch rows per grid step; fits v5e/v6e/v7x VMEM with large margin


def _round_up(x, m):
    return ((x + m - 1) // m) * m


def _dqn_kernel(x_ref, w1_ref, b1_ref, w2_ref, b2_ref, w3_ref, b3_ref, out_ref):
    """One batch tile: out = relu(relu(x@w1+b1)@w2+b2)@w3+b3.

    Matmul operands are bf16 (MXU native); accumulation, bias-add and relu are f32.
    """
    # fc1 + relu
    h1 = jnp.dot(x_ref[...], w1_ref[...], preferred_element_type=jnp.float32)
    h1 = jnp.maximum(h1 + b1_ref[...], 0.0)
    # fc2 + relu
    h2 = jnp.dot(h1.astype(w2_ref.dtype), w2_ref[...],
                 preferred_element_type=jnp.float32)
    h2 = jnp.maximum(h2 + b2_ref[...], 0.0)
    # A head (no activation); lane-padded columns are zero weights/bias.
    a = jnp.dot(h2.astype(w3_ref.dtype), w3_ref[...],
                preferred_element_type=jnp.float32)
    out_ref[...] = (a + b3_ref[...]).astype(out_ref.dtype)


def dqn_forward(state, params, *, tile_b=_TILE_B):
    """state: [B, input_dims] f32 -> advantages A: [B, n_actions] f32."""
    w1, b1, w2, b2, w3, b3 = params
    B, D = state.shape
    H1 = w1.shape[1]           # 128
    H2 = w2.shape[1]           # 64
    n_actions = w3.shape[1]

    # --- lane-dense output: pad n_actions -> multiple of 128 ---------------
    n_pad = _round_up(max(n_actions, _LANE), _LANE)
    w3p = jnp.pad(w3, ((0, 0), (0, n_pad - n_actions)))
    b3p = jnp.pad(b3, ((0, 0), (0, n_pad - n_actions)))

    # --- batch tiling: pad B to a multiple of the (8-aligned) tile ---------
    tb = _round_up(min(tile_b, _round_up(B, _SUBLANE)), _SUBLANE)
    b_pad = _round_up(B, tb)
    x = jnp.pad(state, ((0, b_pad - B), (0, 0)))

    # --- bf16 matmul operands, f32 biases -----------------------------------
    bf16 = jnp.bfloat16
    x = x.astype(bf16)
    w1c, w2c, w3c = w1.astype(bf16), w2.astype(bf16), w3p.astype(bf16)
    b1c = b1.astype(jnp.float32)
    b2c = b2.astype(jnp.float32)
    b3c = b3p.astype(jnp.float32)

    grid = (b_pad // tb,)

    def resident(a):
        # Full-array block whose block index never changes -> stays in VMEM.
        return pl.BlockSpec(a.shape, lambda i: (0,) * a.ndim)

    flops = 2 * b_pad * (D * H1 + H1 * H2 + H2 * n_pad)
    bytes_accessed = (
        int(x.size) * x.dtype.itemsize
        + sum(int(a.size) * a.dtype.itemsize
              for a in (w1c, b1c, w2c, b2c, w3c, b3c))
        + b_pad * n_pad * 4)

    out_padded = pl.pallas_call(
        _dqn_kernel,
        out_shape=jax.ShapeDtypeStruct((b_pad, n_pad), jnp.float32),
        grid=grid,
        in_specs=[
            pl.BlockSpec((tb, D), lambda i: (i, 0)),   # state: tiled over batch
            resident(w1c), resident(b1c),
            resident(w2c), resident(b2c),
            resident(w3c), resident(b3c),
        ],
        out_specs=pl.BlockSpec((tb, n_pad), lambda i: (i, 0)),
        compiler_params=pltpu.CompilerParams(
            dimension_semantics=("parallel",),
            vmem_limit_bytes=64 * 1024 * 1024,
        ),
        cost_estimate=pl.CostEstimate(
            flops=flops, transcendentals=0, bytes_accessed=bytes_accessed),
    )(x, w1c, b1c, w2c, b2c, w3c, b3c)

    return out_padded[:B, :n_actions]


def init_params(key, input_dims, n_actions):
    """Deterministic init matching nn.Linear's U(-1/sqrt(fan_in), 1/sqrt(fan_in))."""
    def linear(k, fan_in, fan_out):
        kw, kb = jax.random.split(k)
        bound = 1.0 / jnp.sqrt(fan_in)
        w = jax.random.uniform(kw, (fan_in, fan_out), jnp.float32, -bound, bound)
        b = jax.random.uniform(kb, (1, fan_out), jnp.float32, -bound, bound)
        return w, b

    k1, k2, k3 = jax.random.split(key, 3)
    w1, b1 = linear(k1, input_dims, 128)
    w2, b2 = linear(k2, 128, 64)
    w3, b3 = linear(k3, 64, n_actions)
    return (w1, b1, w2, b2, w3, b3)


def reference_forward(state, params):
    """Pure-JAX reference mirroring the kernel's bf16-operand / f32-accumulate math."""
    w1, b1, w2, b2, w3, b3 = params
    bf16 = jnp.bfloat16
    h1 = jnp.maximum(
        jnp.dot(state.astype(bf16), w1.astype(bf16),
                preferred_element_type=jnp.float32) + b1, 0.0)
    h2 = jnp.maximum(
        jnp.dot(h1.astype(bf16), w2.astype(bf16),
                preferred_element_type=jnp.float32) + b2, 0.0)
    return jnp.dot(h2.astype(bf16), w3.astype(bf16),
                   preferred_element_type=jnp.float32) + b3


if __name__ == "__main__":
    key = jax.random.PRNGKey(0)
    k_state, k_params, k_big = jax.random.split(key, 3)

    # Small online-inference style shape (LunarLander-like).
    batch = 8
    input_dims = 8
    n_actions = 4

    state = jax.random.normal(k_state, (batch, input_dims), jnp.float32)
    params = init_params(k_params, input_dims, n_actions)

    out = jax.block_until_ready(dqn_forward(state, params))
    ref = reference_forward(state, params)
    assert out.shape == (batch, n_actions)
    assert jnp.allclose(out, ref, atol=1e-2, rtol=1e-2), "mismatch vs reference (small batch)"

    # Replay-buffer style batch exercising the multi-tile grid + padding path.
    big_batch = 384  # -> 2 grid steps of 256 rows with zero-padding to 512
    big_state = jax.random.normal(k_big, (big_batch, input_dims), jnp.float32)
    big_out = jax.block_until_ready(dqn_forward(big_state, params))
    big_ref = reference_forward(big_state, params)
    assert big_out.shape == (big_batch, n_actions)
    assert jnp.allclose(big_out, big_ref, atol=1e-2, rtol=1e-2), "mismatch vs reference (big batch)"

    print("KERNEL_OK")
</pallas_src>

<mosaic_0001>
module attributes {stable_mosaic.version = 11 : i64} {
  func.func @_dqn_kernel(%arg0: i32, %arg1: memref<8x8xbf16, #tpu.memory_space<vmem>>, %arg2: memref<8x128xbf16, #tpu.memory_space<vmem>>, %arg3: memref<1x128xf32, #tpu.memory_space<vmem>>, %arg4: memref<128x64xbf16, #tpu.memory_space<vmem>>, %arg5: memref<1x64xf32, #tpu.memory_space<vmem>>, %arg6: memref<64x128xbf16, #tpu.memory_space<vmem>>, %arg7: memref<1x128xf32, #tpu.memory_space<vmem>>, %arg8: memref<8x128xf32, #tpu.memory_space<vmem>>) attributes {dimension_semantics = [#tpu.dimension_semantics<parallel>], iteration_bounds = array<i64: 1>, scalar_prefetch = 0 : i64, scratch_operands = 0 : i64, tpu.core_type = #tpu.core_type<tc>, window_params = [{transform_indices = @transform_0, window_bounds = array<i64: 8, 8>}, {pipeline_mode = #tpu.pipeline_mode<synchronous>, transform_indices = @transform_1, window_bounds = array<i64: 8, 128>}, {pipeline_mode = #tpu.pipeline_mode<synchronous>, transform_indices = @transform_2, window_bounds = array<i64: 1, 128>}, {pipeline_mode = #tpu.pipeline_mode<synchronous>, transform_indices = @transform_3, window_bounds = array<i64: 128, 64>}, {pipeline_mode = #tpu.pipeline_mode<synchronous>, transform_indices = @transform_4, window_bounds = array<i64: 1, 64>}, {pipeline_mode = #tpu.pipeline_mode<synchronous>, transform_indices = @transform_5, window_bounds = array<i64: 64, 128>}, {pipeline_mode = #tpu.pipeline_mode<synchronous>, transform_indices = @transform_6, window_bounds = array<i64: 1, 128>}, {transform_indices = @transform_7, window_bounds = array<i64: 8, 128>}]} {
    %c0 = arith.constant 0 : index
    %c0_0 = arith.constant 0 : index
    %0 = vector.load %arg1[%c0, %c0_0] : memref<8x8xbf16, #tpu.memory_space<vmem>>, vector<8x8xbf16>
    %c0_1 = arith.constant 0 : index
    %c0_2 = arith.constant 0 : index
    %1 = vector.load %arg2[%c0_1, %c0_2] : memref<8x128xbf16, #tpu.memory_space<vmem>>, vector<8x128xbf16>
    %cst = arith.constant dense<0.000000e+00> : vector<8x128xf32>
    %2 = tpu.matmul %0, %1, %cst {dimension_numbers = #tpu.dot_dimension_numbers<[1], [0], [0], [1], [0, 0, 1, 1], [], []>} : vector<8x8xbf16>, vector<8x128xbf16>, vector<8x128xf32> -> vector<8x128xf32>
    %c0_3 = arith.constant 0 : index
    %c0_4 = arith.constant 0 : index
    %3 = vector.load %arg3[%c0_3, %c0_4] : memref<1x128xf32, #tpu.memory_space<vmem>>, vector<1x128xf32>
    %4 = vector.broadcast %3 : vector<1x128xf32> to vector<8x128xf32>
    %5 = arith.addf %2, %4 : vector<8x128xf32>
    %cst_5 = arith.constant 0.000000e+00 : f32
    %6 = vector.broadcast %cst_5 : f32 to vector<8x128xf32>
    %7 = arith.maximumf %5, %6 : vector<8x128xf32>
    %8 = arith.truncf %7 : vector<8x128xf32> to vector<8x128xbf16>
    %c0_6 = arith.constant 0 : index
    %c0_7 = arith.constant 0 : index
    %9 = vector.load %arg4[%c0_6, %c0_7] : memref<128x64xbf16, #tpu.memory_space<vmem>>, vector<128x64xbf16>
    %cst_8 = arith.constant dense<0.000000e+00> : vector<8x64xf32>
    %10 = tpu.matmul %8, %9, %cst_8 {dimension_numbers = #tpu.dot_dimension_numbers<[1], [0], [0], [1], [0, 0, 1, 1], [], []>} : vector<8x128xbf16>, vector<128x64xbf16>, vector<8x64xf32> -> vector<8x64xf32>
    %c0_9 = arith.constant 0 : index
    %c0_10 = arith.constant 0 : index
    %11 = vector.load %arg5[%c0_9, %c0_10] : memref<1x64xf32, #tpu.memory_space<vmem>>, vector<1x64xf32>
    %12 = vector.broadcast %11 : vector<1x64xf32> to vector<8x64xf32>
    %13 = arith.addf %10, %12 : vector<8x64xf32>
    %cst_11 = arith.constant 0.000000e+00 : f32
    %14 = vector.broadcast %cst_11 : f32 to vector<8x64xf32>
    %15 = arith.maximumf %13, %14 : vector<8x64xf32>
    %16 = arith.truncf %15 : vector<8x64xf32> to vector<8x64xbf16>
    %c0_12 = arith.constant 0 : index
    %c0_13 = arith.constant 0 : index
    %17 = vector.load %arg6[%c0_12, %c0_13] : memref<64x128xbf16, #tpu.memory_space<vmem>>, vector<64x128xbf16>
    %cst_14 = arith.constant dense<0.000000e+00> : vector<8x128xf32>
    %18 = tpu.matmul %16, %17, %cst_14 {dimension_numbers = #tpu.dot_dimension_numbers<[1], [0], [0], [1], [0, 0, 1, 1], [], []>} : vector<8x64xbf16>, vector<64x128xbf16>, vector<8x128xf32> -> vector<8x128xf32>
    %c0_15 = arith.constant 0 : index
    %c0_16 = arith.constant 0 : index
    %19 = vector.load %arg7[%c0_15, %c0_16] : memref<1x128xf32, #tpu.memory_space<vmem>>, vector<1x128xf32>
    %20 = vector.broadcast %19 : vector<1x128xf32> to vector<8x128xf32>
    %21 = arith.addf %18, %20 : vector<8x128xf32>
    %c0_17 = arith.constant 0 : index
    %c0_18 = arith.constant 0 : index
    %22 = vector.load %arg8[%c0_17, %c0_18] : memref<8x128xf32, #tpu.memory_space<vmem>>, vector<8x128xf32>
    tpu.vector_store %arg8[%c0_17, %c0_18], %21 {strides = array<i32>} : memref<8x128xf32, #tpu.memory_space<vmem>>, vector<8x128xf32>,
    return
  }
  func.func @transform_0(%arg0: i32) -> (i32, i32) {
    %c0_i32 = arith.constant 0 : i32
    %c0_i32_0 = arith.constant 0 : i32
    return %arg0, %c0_i32 : i32, i32
  }
  func.func @transform_1(%arg0: i32) -> (i32, i32) {
    %c0_i32 = arith.constant 0 : i32
    %c0_i32_0 = arith.constant 0 : i32
    %c0_i32_1 = arith.constant 0 : i32
    return %c0_i32, %c0_i32_0 : i32, i32
  }
  func.func @transform_2(%arg0: i32) -> (i32, i32) {
    %c0_i32 = arith.constant 0 : i32
    %c0_i32_0 = arith.constant 0 : i32
    %c0_i32_1 = arith.constant 0 : i32
    return %c0_i32, %c0_i32_0 : i32, i32
  }
  func.func @transform_3(%arg0: i32) -> (i32, i32) {
    %c0_i32 = arith.constant 0 : i32
    %c0_i32_0 = arith.constant 0 : i32
    %c0_i32_1 = arith.constant 0 : i32
    return %c0_i32, %c0_i32_0 : i32, i32
  }
  func.func @transform_4(%arg0: i32) -> (i32, i32) {
    %c0_i32 = arith.constant 0 : i32
    %c0_i32_0 = arith.constant 0 : i32
    %c0_i32_1 = arith.constant 0 : i32
    return %c0_i32, %c0_i32_0 : i32, i32
  }
  func.func @transform_5(%arg0: i32) -> (i32, i32) {
    %c0_i32 = arith.constant 0 : i32
    %c0_i32_0 = arith.constant 0 : i32
    %c0_i32_1 = arith.constant 0 : i32
    return %c0_i32, %c0_i32_0 : i32, i32
  }
  func.func @transform_6(%arg0: i32) -> (i32, i32) {
    %c0_i32 = arith.constant 0 : i32
    %c0_i32_0 = arith.constant 0 : i32
    %c0_i32_1 = arith.constant 0 : i32
    return %c0_i32, %c0_i32_0 : i32, i32
  }
  func.func @transform_7(%arg0: i32) -> (i32, i32) {
    %c0_i32 = arith.constant 0 : i32
    %c0_i32_0 = arith.constant 0 : i32
    return %arg0, %c0_i32 : i32, i32
  }
}

</mosaic_0001>

<bundles_post_ra>
// kernel: tpu_custom_call.1
= control target key start
LH: loop header
LB: loop body
LE: loop exit
PB: predicated region body
PF: predicated region fallthrough
CT: control target
= control target key end

     0   :  { %12 = vsyncpa [#allocation3], 0  ;;  %s826_s0 = inlined_call_operand.hbm [shape: bf16[8,8], index: 0, kind: input, shape index: {}]   ;;  %s827_s1 = inlined_call_operand.hbm [shape: bf16[8,128], index: 1, kind: input, shape index: {}]   ;;  %s828_s2 = inlined_call_operand.hbm [shape: f32[1,128], index: 2, kind: input, shape index: {}]   ;;  %s829_s3 = inlined_call_operand.hbm [shape: bf16[128,64], index: 3, kind: input, shape index: {}]   ;;  %s830_s4 = inlined_call_operand.hbm [shape: f32[1,64], index: 4, kind: input, shape index: {}]   ;;  %s831_s5 = inlined_call_operand.hbm [shape: bf16[64,128], index: 5, kind: input, shape index: {}]   ;;  %s832_s6 = inlined_call_operand.hbm [shape: f32[1,128], index: 6, kind: input, shape index: {}]   ;;  %s833_s7 = inlined_call_operand.hbm [shape: f32[8,128], index: 7, kind: output, shape index: {}]  }
   0x1   :  { %13 = vsyncpa [#allocation6], 0 }
   0x2   :  { %14 = vsyncpa [#allocation9], 0 }
   0x3   :  { %15 = vsyncpa [#allocation12], 0 }
   0x4   :  { %16 = vsyncpa [#allocation4], 0  ;;  %s668_s24 = smov [#allocation5]   ;;  %s669_s26 = smov [#allocation8]  }
   0x5   :  { %s33_s25 = sshll.u32 %s668_s24, 4  ;;  %s52_s27 = sshll.u32 %s669_s26, 4  ;;  %s34_s25 = int_to_ptr.vmem [resolvable:$true] %s33_s25  ;;  %s720_s27 = int_to_ptr.vmem [resolvable:$true] %s52_s27 }
   0x6   :  { %s482_s30 = scalar_lea.hbm %s827_s1, 64 }
   0x7   :  { %p483_p0 = scmp.ne.s32.totalorder %s827_s1, %s482_s30  ;;  %p486_p1 = scmp.lt.u32.totalorder %s482_s30, %s827_s1 }
   0x9   :  { %p488_p2 = pnand %p486_p1, %p483_p0 }
   0xb   :  { %491 = shalt.err (!%p488_p2)
}
   0xc   :  { %s492_s12 = scalar_lea.vmem %s34_s25, 64  ;;  %p497_p4 = scmp.lt.s32.totalorder %s34_s25, %s34_s25 }
   0xd   :  { %p493_p3 = scmp.ne.s32.totalorder %s34_s25, %s492_s12  ;;  %p498_p5 = scmp.lt.s32.totalorder %s492_s12, %s492_s12 }
   0xf   :  { %p499_p6 = por %p498_p5, %p497_p4 }
  0x11   :  { %p500_p7 = pnand %p499_p6, %p493_p3 }
  0x13   :  { %503 = shalt.err (!%p500_p7)
}
  0x14   :  { %36 = dma.hbm_to_vmem [thread:$0]  %s827_s1, 64, %s34_s25, [#allocation6]  }
  0x15   :  { %s504_s17 = scalar_lea.hbm %s829_s3, 1024 }
  0x16   :  { %p505_p8 = scmp.ne.s32.totalorder %s829_s3, %s504_s17  ;;  %p508_p9 = scmp.lt.u32.totalorder %s504_s17, %s829_s3 }
  0x18   :  { %p510_p10 = pnand %p508_p9, %p505_p8 }
  0x1a   :  { %513 = shalt.err (!%p510_p10)
}
  0x1b   :  { %s514_s22 = scalar_lea.vmem %s720_s27, 1024  ;;  %p519_p12 = scmp.lt.s32.totalorder %s720_s27, %s720_s27 }
  0x1c   :  { %p515_p11 = scmp.ne.s32.totalorder %s720_s27, %s514_s22  ;;  %p520_p13 = scmp.lt.s32.totalorder %s514_s22, %s514_s22 }
  0x1e   :  { %p521_p0 = por %p520_p13, %p519_p12 }
  0x20   :  { %p522_p1 = pnand %p521_p0, %p515_p11 }
  0x22   :  { %525 = shalt.err (!%p522_p1)
}
  0x23   :  { %s670_s1 = smov 64   ;;  %s671_s23 = smov 4  }
  0x24   :  { %58 = dma.hbm_to_vmem [thread:$0]  %s829_s3, 1024, %s720_s27, [#allocation9], %s670_s1, %s670_s1, %s671_s23  }
  0x25   :  { %s672_s26 = smov [#allocation11]   ;;  %s673_s29 = smov [#allocation2]  }
  0x26   :  { %s74_s28 = sshll.u32 %s672_s26, 4  ;;  %s23_s30 = sshll.u32 %s673_s29, 4  ;;  %s75_s28 = int_to_ptr.vmem [resolvable:$true] %s74_s28  ;;  %s24_s30 = int_to_ptr.vmem [resolvable:$true] %s23_s30 }
  0x27   :  { %s526_s10 = scalar_lea.hbm %s831_s5, 512 }
  0x28   :  { %p527_p2 = scmp.ne.s32.totalorder %s831_s5, %s526_s10  ;;  %p530_p3 = scmp.lt.u32.totalorder %s526_s10, %s831_s5 }
  0x2a   :  { %p532_p4 = pnand %p530_p3, %p527_p2 }
  0x2c   :  { %535 = shalt.err (!%p532_p4)
}
  0x2d   :  { %s536_s3 = scalar_lea.vmem %s75_s28, 512  ;;  %p541_p6 = scmp.lt.s32.totalorder %s75_s28, %s75_s28 }
  0x2e   :  { %p537_p5 = scmp.ne.s32.totalorder %s75_s28, %s536_s3  ;;  %p542_p7 = scmp.lt.s32.totalorder %s536_s3, %s536_s3 }
  0x30   :  { %p543_p8 = por %p542_p7, %p541_p6 }
  0x32   :  { %p544_p9 = pnand %p543_p8, %p537_p5 }
  0x34   :  { %547 = shalt.err (!%p544_p9)
}
  0x35   :  { %80 = dma.hbm_to_vmem [thread:$0]  %s831_s5, 512, %s75_s28, [#allocation12], %s670_s1, %s670_s1, %s671_s23  }
  0x36   :  { %s548_s18 = scalar_lea.hbm %s826_s0, 64 }
  0x37   :  { %p549_p10 = scmp.ne.s32.totalorder %s826_s0, %s548_s18  ;;  %p552_p11 = scmp.lt.u32.totalorder %s548_s18, %s826_s0 }
  0x39   :  { %p554_p12 = pnand %p552_p11, %p549_p10 }
  0x3b   :  { %557 = shalt.err (!%p554_p12)
}
  0x3c   :  { %s558_s24 = scalar_lea.vmem %s24_s30, 64  ;;  %p563_p0 = scmp.lt.s32.totalorder %s24_s30, %s24_s30 }
  0x3d   :  { %p559_p13 = scmp.ne.s32.totalorder %s24_s30, %s558_s24  ;;  %p564_p1 = scmp.lt.s32.totalorder %s558_s24, %s558_s24 }
  0x3f   :  { %p565_p2 = por %p564_p1, %p563_p0 }
  0x41   :  { %p566_p3 = pnand %p565_p2, %p559_p13 }
  0x43   :  { %569 = shalt.err (!%p566_p3)
}
  0x44   :  { %26 = dma.hbm_to_vmem [thread:$0]  %s826_s0, 64, %s24_s30, [#allocation3]  }
  0x45   :  { %s674_s23 = smov [#allocation7]   ;;  %s675_s26 = smov [#allocation10]  }
  0x46   :  { %s43_s25 = sshll.u32 %s674_s23, 4  ;;  %s65_s28 = sshll.u32 %s675_s26, 4  ;;  %s44_s25 = int_to_ptr.vmem [resolvable:$true] %s43_s25  ;;  %s66_s28 = int_to_ptr.vmem [resolvable:$true] %s65_s28 }
  0x47   :  { %s570_s9 = scalar_lea.hbm %s828_s2, 16 }
  0x48   :  { %p571_p4 = scmp.ne.s32.totalorder %s828_s2, %s570_s9  ;;  %p574_p5 = scmp.lt.u32.totalorder %s570_s9, %s828_s2 }
  0x4a   :  { %p576_p6 = pnand %p574_p5, %p571_p4 }
  0x4c   :  { %579 = shalt.err (!%p576_p6)
}
  0x4d   :  { %s580_s0 = scalar_lea.vmem %s44_s25, 16  ;;  %s584_s30 = scalar_lea.vmem %s44_s25, 32 }
  0x4e   :  { %p581_p7 = scmp.ne.s32.totalorder %s44_s25, %s580_s0  ;;  %p585_p8 = scmp.lt.s32.totalorder %s44_s25, %s44_s25 }
  0x4f   :  { %p586_p9 = scmp.lt.s32.totalorder %s584_s30, %s580_s0 }
  0x51   :  { %p587_p10 = por %p586_p9, %p585_p8 }
  0x53   :  { %p588_p11 = pnand %p587_p10, %p581_p7 }
  0x55   :  { %591 = shalt.err (!%p588_p11)
}
  0x56   :  { %46 = dma.hbm_to_vmem [thread:$0]  %s828_s2, 16, %s44_s25, [#allocation6]  }
  0x57   :  { %s592_s16 = scalar_lea.hbm %s830_s4, 16 }
  0x58   :  { %p593_p12 = scmp.ne.s32.totalorder %s830_s4, %s592_s16  ;;  %p596_p13 = scmp.lt.u32.totalorder %s592_s16, %s830_s4 }
  0x5a   :  { %p598_p0 = pnand %p596_p13, %p593_p12 }
  0x5c   :  { %601 = shalt.err (!%p598_p0)
}
  0x5d   :  { %s602_s21 = scalar_lea.vmem %s66_s28, 16  ;;  %s606_s22 = scalar_lea.vmem %s66_s28, 32 }
  0x5e   :  { %p603_p1 = scmp.ne.s32.totalorder %s66_s28, %s602_s21  ;;  %p607_p2 = scmp.lt.s32.totalorder %s66_s28, %s66_s28 }
  0x5f   :  { %p608_p3 = scmp.lt.s32.totalorder %s606_s22, %s602_s21 }
  0x61   :  { %p609_p4 = por %p608_p3, %p607_p2 }
  0x63   :  { %p610_p5 = pnand %p609_p4, %p603_p1 }
  0x65   :  { %613 = shalt.err (!%p610_p5)
}
  0x66   :  { %68 = dma.hbm_to_vmem [thread:$0]  %s830_s4, 16, %s66_s28, [#allocation9]  }
  0x67   :  { %s676_s5 = smov [#allocation13]   ;;  %s614_s26 = scalar_lea.hbm %s832_s6, 16 }
  0x68   :  { %s87_s1 = sshll.u32 %s676_s5, 4  ;;  %p615_p6 = scmp.ne.s32.totalorder %s832_s6, %s614_s26  ;;  %s88_s1 = int_to_ptr.vmem [resolvable:$true] %s87_s1 }
  0x69   :  { %p618_p7 = scmp.lt.u32.totalorder %s614_s26, %s832_s6 }
  0x6b   :  { %p620_p8 = pnand %p618_p7, %p615_p6 }
  0x6d   :  { %623 = shalt.err (!%p620_p8)
}
  0x6e   :  { %s624_s11 = scalar_lea.vmem %s88_s1, 16  ;;  %s628_s4 = scalar_lea.vmem %s88_s1, 32 }
  0x6f   :  { %p625_p9 = scmp.ne.s32.totalorder %s88_s1, %s624_s11  ;;  %p629_p10 = scmp.lt.s32.totalorder %s88_s1, %s88_s1 }
  0x70   :  { %p630_p11 = scmp.lt.s32.totalorder %s628_s4, %s624_s11 }
  0x72   :  { %p631_p12 = por %p630_p11, %p629_p10 }
  0x74   :  { %p632_p13 = pnand %p631_p12, %p625_p9 }
  0x76   :  { %635 = shalt.err (!%p632_p13)
}
  0x77   :  { %90 = dma.hbm_to_vmem [thread:$0]  %s832_s6, 16, %s88_s1, [#allocation12]  }
  0x78   :  { %658 = dma.done.wait [#allocation3], 64  }
  0x79   :  { %659 = vsyncadd [#allocation3], 4294967232 }
  0x7a   :  { %660 = dma.done.wait [#allocation6], 80  }
  0x7b   :  { %661 = vsyncadd [#allocation6], 4294967216 }
  0x7c   :  { %662 = dma.done.wait [#allocation9], 1040  }
  0x7d   :  { %663 = vsyncadd [#allocation9], 4294966256 }
  0x7e   :  { %664 = dma.done.wait [#allocation12], 528  }
  0x7f   :  { %665 = vsyncadd [#allocation12], 4294966768  ;;  %v677_v0 = vmov 0.0   ;;  %vm678_vm0 = vmmov 0   ;;  %vm126_vm1 = vcmask 1043456   ;;  %vm122_vm2 = vcmask 64512  }
  0x80   :  { %420 = vmatprep.subr.bf16.mxu0 %v677_v0  ;;  %422 = vmatprep.mubr.msk.bf16.mxu0 %vm678_vm0, %v677_v0  ;;  %v114_v1 = vld [vmem:[#allocation5] sm:$0xf]  ;;  %v470_v3 = vld [vmem:[#allocation8] sm:$0xff]   ;;  %v113_v4 = vld [vmem:[#allocation2] sm:$0xf]  ;;  %vm324_vm3 = vcmask 523264  }
  0x81   :  { %426 = vmatprep.subr.bf16.mxu1 %v677_v0  ;;  %442 = vmatprep.mubr.msk.bf16.mxu1 %vm678_vm0, %v677_v0  ;;  %v128_v2 = vsel %vm126_vm1, %v114_v1, 0  ;;  %v471_v5 = vld [vmem:[#allocation8 + $0x8] sm:$0xff]   ;;  %v472_v6 = vld [vmem:[#allocation8 + $0x10] sm:$0xff]   ;;  %v473_v7 = vld [vmem:[#allocation8 + $0x18] sm:$0xff]   ;;  %s679_s6 = smov [#allocation14]  }
  0x82   :  { %421 = vmatpush3.bf16.msra.mxu0 %v128_v2  ;;  %427 = vmatpush3.bf16.msra.mxu1 %v470_v3  ;;  %v474_v8 = vld [vmem:[#allocation8 + $0x20] sm:$0xff]   ;;  %v475_v9 = vld [vmem:[#allocation8 + $0x28] sm:$0xff]   ;;  %v476_v10 = vld [vmem:[#allocation8 + $0x30] sm:$0xff]   ;;  %s375_s13 = sshll.u32 %s679_s6, 4  ;;  %s376_s13 = int_to_ptr.vmem [resolvable:$true] %s375_s13 }
  0x83   :  { %446 = vmatprep.subr.bf16.mxu0 %v677_v0  ;;  %428 = vmatprep.subr.bf16.mxu1 %v677_v0  ;;  %v477_v11 = vld [vmem:[#allocation8 + $0x38] sm:$0xff]   ;;  %v478_v12 = vld [vmem:[#allocation11] sm:$0xff]   ;;  %v479_v13 = vld [vmem:[#allocation11 + $0x8] sm:$0xff]   ;;  %s636_s0 = scalar_lea.vmem %s376_s13, 128  ;;  %p641_p1 = scmp.lt.s32.totalorder %s376_s13, %s376_s13 }
  0x84   :  { %v387_v14 = vld [vmem:[#allocation7] ss:$0 sm:$0xff]  ;;  %v480_v22 = vld [vmem:[#allocation11 + $0x10] sm:$0xff]   ;;  %v389_v24 = vld [vmem:[#allocation10] ss:$0 sm:$0xff]  ;;  %p637_p0 = scmp.ne.s32.totalorder %s376_s13, %s636_s0  ;;  %p642_p2 = scmp.lt.s32.totalorder %s636_s0, %s636_s0 }
  0x85   :  { %423 = vmatmul.mubr.msk.bf16.vlgmr.msra.gmra.mrb[0].mxu0 %vm122_vm2, %v113_v4  ;;  %v481_v23 = vld [vmem:[#allocation11 + $0x18] sm:$0xff]   ;;  %v398_v32 = vld [vmem:[#allocation13] ss:$0 sm:$0xff] }
  0x86   :  { %454 = vmatprep.mubr.msk.bf16.mxu0 %vm678_vm0, %v677_v0  ;;  %429 = vmatpush3.bf16.msra.mxu1 %v471_v5  ;;  %p643_p3 = por %p642_p2, %p641_p1 }
  0x87   :  { %430 = vmatprep.subr.bf16.mxu1 %v677_v0  ;;  %447 = vmatpush3.bf16.msra.mxu0 %v478_v12 }
  0x88   :  { %448 = vmatprep.subr.bf16.mxu0 %v677_v0  ;;  %p644_p4 = pnand %p643_p3, %p637_p0 }
  0x8a   :  { %431 = vmatpush3.bf16.msra.mxu1 %v472_v6 }
  0x8b   :  { %432 = vmatprep.subr.bf16.mxu1 %v677_v0  ;;  %449 = vmatpush3.bf16.msra.mxu0 %v479_v13 }
  0x8c   :  { %450 = vmatprep.subr.bf16.mxu0 %v677_v0 }
  0x8e   :  { %433 = vmatpush3.bf16.msra.mxu1 %v473_v7 }
  0x8f   :  { %434 = vmatprep.subr.bf16.mxu1 %v677_v0  ;;  %451 = vmatpush3.bf16.msra.mxu0 %v480_v22 }
  0x90   :  { %452 = vmatprep.subr.bf16.mxu0 %v677_v0 }
  0x92   :  { %435 = vmatpush3.bf16.msra.mxu1 %v474_v8 }
  0x93   :  { %436 = vmatprep.subr.bf16.mxu1 %v677_v0  ;;  %453 = vmatpush3.bf16.msra.mxu0 %v481_v23 }
  0x96   :  { %437 = vmatpush3.bf16.msra.mxu1 %v475_v9 }
  0x97   :  { %438 = vmatprep.subr.bf16.mxu1 %v677_v0 }
  0x9a   :  { %439 = vmatpush3.bf16.msra.mxu1 %v476_v10 }
  0x9b   :  { %440 = vmatprep.subr.bf16.mxu1 %v677_v0 }
  0x9e   :  { %441 = vmatpush3.bf16.msra.mxu1 %v477_v11 }
 0x158   :  { %v164_v15 = vpop.f32.mrb[0].mxu0 }
 0x159   :  { %v165_v16 = vadd.f32 %v387_v14, %v164_v15  ;;  %v424_v17 = vpop.f32.mrb[1].mxu0 }
 0x15a   :  { %v167_v18 = vpop.f32.mrb[2].mxu0 }
 0x15b   :  { %v170_v19 = vmax.f32 %v165_v16, 0.0  ;;  %v425_v20 = vpop.f32.mrb[3].mxu0 }
 0x15d   :  { %v171_v21 = vpack.c.bf16 %v170_v19, %v170_v19 }
 0x15f   :  { %443 = vmatmul.mubr.bf16.vlgmr.msra.gmra.mrb[0].mxu1 %v171_v21 }
 0x232   :  { %v277_v25 = vpop.f32.mrb[0].mxu1 }
 0x233   :  { %v278_v26 = vadd.f32 %v389_v24, %v277_v25  ;;  %v444_v27 = vpop.f32.mrb[1].mxu1 }
 0x234   :  { %v280_v28 = vpop.f32.mrb[2].mxu1 }
 0x235   :  { %v283_v29 = vmax.f32 %v278_v26, 0.0  ;;  %v445_v30 = vpop.f32.mrb[3].mxu1 }
 0x237   :  { %v284_v31 = vpack.c.bf16 %v283_v29, %v283_v29 }
 0x239   :  { %455 = vmatmul.mubr.msk.bf16.vlgmr.msra.gmra.mrb[4].mxu0 %vm324_vm3, %v284_v31 }
 0x30c   :  { %v362_v33 = vpop.f32.mrb[4].mxu0 }
 0x30d   :  { %v363_v34 = vadd.f32 %v398_v32, %v362_v33  ;;  %v456_v35 = vpop.f32.mrb[5].mxu0 }
 0x30e   :  { %v365_v36 = vpop.f32.mrb[6].mxu0 }
 0x30f   :  { %368 = vst [vmem:[#allocation14] sm:$0xff] %v363_v34  ;;  %v457_v37 = vpop.f32.mrb[7].mxu0 }
 0x310   :  { %647 = shalt.err (!%p644_p4)
}
 0x311   :  { %s648_s3 = scalar_lea.hbm %s833_s7, 128 }
 0x312   :  { %p649_p5 = scmp.ne.s32.totalorder %s833_s7, %s648_s3  ;;  %p652_p6 = scmp.lt.u32.totalorder %s648_s3, %s833_s7 }
 0x314   :  { %p654_p7 = pnand %p652_p6, %p649_p5 }
 0x316   :  { %657 = shalt.err (!%p654_p7)
}
 0x317   :  { %378 = dma.vmem_to_hbm [thread:$0]  %s376_s13, 128, %s833_s7, [#allocation4]  }
 0x318   :  { %666 = dma.done.wait [#allocation4], 128  }
 0x319   :  { %667 = vsyncadd [#allocation4], 4294967168 }
 0x31a   :  { %382 = vsyncpa [#allocation3], 1 }
 0x31b   :  { %383 = vsyncpa [#allocation6], 1 }
 0x31c   :  { %384 = vsyncpa [#allocation9], 1 }
 0x31d   :  { %385 = vsyncpa [#allocation12], 1 }
 0x31e   :  { %386 = vsyncpa [#allocation4], 1 }

</bundles_post_ra>
